<compile_context>
chip_gen: v7x
topology: tpu7x:2x2x1
jax: 0.10.0
libtpu: 0.0.40
codegen_flags: <defaults>
</compile_context>

<pallas_src>
import functools

import jax
import jax.numpy as jnp
from jax import lax
from jax.experimental import pallas as pl
from jax.experimental.pallas import tpu as pltpu


def _round_up(n, m):
    return ((n + m - 1) // m) * m


def _convlstm_kernel(x_ref, w_ref, c_ref, hn_ref, cn_ref, *, hid, kh, w_img, tm):
    """One grid step = one (batch, M-tile) of `tm` flattened spatial positions.

    x_ref  : (Kxp, tm + (kh-1)*W) bf16  x-folded patch chunk (K on sublanes,
                                        flattened (y_pad*W + x) on lanes)
    w_ref  : (kh, 4*hid, Kxp)     bf16  per-y-tap weights (+bias folded, tap 0)
    c_ref  : (hid, tm)            f32   current cell state
    hn_ref : (hid, tm)            bf16  h_next
    cn_ref : (hid, tm)            f32   c_next
    """
    # kh small MXU matmuls (K = kw*cin folded) over statically shifted slices.
    acc = jnp.dot(w_ref[0], x_ref[:, 0:tm], preferred_element_type=jnp.float32)
    for dy in range(1, kh):
        off = dy * w_img
        acc = acc + jnp.dot(w_ref[dy], x_ref[:, off:off + tm],
                            preferred_element_type=jnp.float32)

    def _sigmoid(v):
        # Exact identity: sigmoid(v) = 0.5*tanh(v/2) + 0.5.
        # tanh -> EUP slot; the mul/add go to otherwise-idle VALU slots.
        return 0.5 * jnp.tanh(0.5 * v) + 0.5

    # Gate splits are 8-aligned sublane slices (hid = 32) -> no relayouts.
    i = _sigmoid(acc[0 * hid:1 * hid, :])
    f = _sigmoid(acc[1 * hid:2 * hid, :])
    o = _sigmoid(acc[2 * hid:3 * hid, :])
    g = jnp.tanh(acc[3 * hid:4 * hid, :])

    c_next = f * c_ref[...] + i * g
    hn_ref[...] = (o * jnp.tanh(c_next)).astype(hn_ref.dtype)
    cn_ref[...] = c_next


def conv_lstm_cell(x_nchw, h_nchw, c_nchw, weight_oihw, bias, kernel_size,
                   *, tile_m=128):
    """Pallas ConvLSTMCell forward.  Inputs in PyTorch NCHW / OIHW layout.

    Returns (h_next, c_next) in NCHW, matching the PyTorch module semantics.
    """
    kh, kw = kernel_size
    ph, pw = kh // 2, kw // 2

    B, Cx, H, W = x_nchw.shape
    hid = h_nchw.shape[1]
    cin = Cx + hid
    gate_ch = 4 * hid

    Kx = kw * cin                        # x-taps + channels folded into K
    Kxp = _round_up(Kx + 1, 128)         # +1 row reserved for the bias ones-row
    TM = tile_m
    Msp = H * W                          # dense per-batch output positions
    Msp_p = _round_up(Msp, TM)
    n_m = Msp_p // TM
    halo = (kh - 1) * W                  # extra lanes needed by the y-taps
    span = TM + halo                     # lanes per input chunk
    L = (H + 2 * ph) * W                 # per-batch y-padded flattened length
    Lneed = Msp_p + halo
    f32 = jnp.float32

    # ---- wrapper glue (small XLA ops; hoist across timesteps in a loop) ----
    x = jnp.transpose(x_nchw, (0, 2, 3, 1)).astype(f32)            # NHWC
    h = jnp.transpose(h_nchw, (0, 2, 3, 1)).astype(f32)
    comb = jnp.concatenate([x, h], axis=-1)                        # (B,H,W,cin)
    comb_p = jnp.pad(comb, ((0, 0), (ph, ph), (pw, pw), (0, 0)))

    # Fold only the kw x-taps (3x, not 9x): K index = dx*cin + ci.
    px = jnp.concatenate(
        [comb_p[:, :, dx:dx + W, :] for dx in range(kw)], axis=-1)  # (B,H+2ph,W,Kx)
    # Channel-major, per-batch flattened (y_pad*W + x) on lanes: (B, Kx, L).
    pxt = jnp.transpose(px, (0, 3, 1, 2)).reshape(B, Kx, L)

    slab = jnp.zeros((B, Kxp, Lneed), f32)
    slab = slab.at[:, :Kx, :L].set(pxt)
    slab = slab.at[:, Kx, :].set(1.0)          # ones-row -> bias via tap dy=0
    # Overlapping per-tile chunks so every in-kernel slice is static.
    chunks = jnp.stack(
        [slab[:, :, t * TM:t * TM + span] for t in range(n_m)],
        axis=1).astype(jnp.bfloat16)                               # (B,n_m,Kxp,span)

    # Weight OIHW -> per-y-tap (kh, 4*hid, Kxp); bias into tap-0 ones-row column.
    w_t = jnp.transpose(weight_oihw.astype(f32), (2, 3, 1, 0)).reshape(kh, Kx, gate_ch)
    w_full = jnp.zeros((kh, Kxp, gate_ch), f32).at[:, :Kx, :].set(w_t)
    if bias is not None:
        w_full = w_full.at[0, Kx, :].set(bias.astype(f32))
    w = jnp.transpose(w_full, (0, 2, 1)).astype(jnp.bfloat16)      # (kh,4*hid,Kxp)

    # Cell state: (B, hid, Msp_p) f32, lane index = y*W + x (matches outputs).
    c = c_nchw.astype(f32).reshape(B, hid, Msp)
    if Msp_p != Msp:
        c = jnp.pad(c, ((0, 0), (0, 0), (0, Msp_p - Msp)))

    kernel = functools.partial(_convlstm_kernel, hid=hid, kh=kh, w_img=W, tm=TM)

    h_flat, c_flat = pl.pallas_call(
        kernel,
        out_shape=(jax.ShapeDtypeStruct((B, hid, Msp_p), jnp.bfloat16),
                   jax.ShapeDtypeStruct((B, hid, Msp_p), jnp.float32)),
        grid_spec=pltpu.PrefetchScalarGridSpec(
            num_scalar_prefetch=0,
            grid=(B, n_m),
            in_specs=[
                # per-(batch, m-tile) patch chunk; full last dim (= span)
                pl.BlockSpec((None, None, Kxp, span), lambda b, m: (b, m, 0, 0)),
                # weight (+bias folded): constant index -> DMA'd once, resident
                pl.BlockSpec((kh, gate_ch, Kxp), lambda b, m: (0, 0, 0)),
                # c_cur tile
                pl.BlockSpec((None, hid, TM), lambda b, m: (b, 0, m)),
            ],
            out_specs=[
                pl.BlockSpec((None, hid, TM), lambda b, m: (b, 0, m)),  # h_next bf16
                pl.BlockSpec((None, hid, TM), lambda b, m: (b, 0, m)),  # c_next f32
            ],
        ),
        input_output_aliases={2: 1},      # reuse the c_cur buffer for c_next
        compiler_params=pltpu.CompilerParams(
            dimension_semantics=("parallel", "parallel")),
    )(chunks, w, c)

    # Packed (B, hid, H*W) is already NCHW-ordered -> no output transpose.
    h_next = h_flat[:, :, :Msp].reshape(B, hid, H, W).astype(x_nchw.dtype)
    c_next = c_flat[:, :, :Msp].reshape(B, hid, H, W)
    return h_next, c_next


def _reference_conv_lstm(x, h, c, weight, bias, kernel_size):
    """Plain-JAX f32 reference (NCHW), mirrors the PyTorch forward exactly."""
    kh, kw = kernel_size
    combined = jnp.concatenate([x, h], axis=1)
    conv = lax.conv_general_dilated(
        combined, weight, window_strides=(1, 1),
        padding=((kh // 2, kh // 2), (kw // 2, kw // 2)),
        dimension_numbers=("NCHW", "OIHW", "NCHW"))
    conv = conv + bias[None, :, None, None]
    hid = h.shape[1]
    cc_i, cc_f, cc_o, cc_g = jnp.split(conv, 4, axis=1)
    i = jax.nn.sigmoid(cc_i)
    f = jax.nn.sigmoid(cc_f)
    o = jax.nn.sigmoid(cc_o)
    g = jnp.tanh(cc_g)
    c_next = f * c + i * g
    h_next = o * jnp.tanh(c_next)
    return h_next, c_next


if __name__ == "__main__":
    # Small, ConvLSTMCell-consistent shapes.
    B, input_dim, hidden_dim = 2, 4, 32
    H, W = 16, 16
    kernel_size = (3, 3)

    key = jax.random.PRNGKey(0)
    kx, kh_, kc, kw_, kb = jax.random.split(key, 5)

    x = jax.random.normal(kx, (B, input_dim, H, W), jnp.float32)
    h_cur = jax.random.normal(kh_, (B, hidden_dim, H, W), jnp.float32)
    c_cur = jax.random.normal(kc, (B, hidden_dim, H, W), jnp.float32)

    # Deterministic synthetic conv parameters (nn.Conv2d shapes: OIHW + bias).
    cin = input_dim + hidden_dim
    weight = jax.random.normal(
        kw_, (4 * hidden_dim, cin, kernel_size[0], kernel_size[1]),
        jnp.float32) * 0.05
    bias = jax.random.normal(kb, (4 * hidden_dim,), jnp.float32) * 0.05

    cell = jax.jit(functools.partial(conv_lstm_cell, kernel_size=kernel_size))
    h_next, c_next = cell(x, h_cur, c_cur, weight, bias)
    jax.block_until_ready((h_next, c_next))

    h_ref, c_ref = _reference_conv_lstm(x, h_cur, c_cur, weight, bias, kernel_size)
    # bf16 matmul inputs (f32 accumulation) + bf16 h store; exact sigmoid/tanh.
    assert jnp.allclose(h_next, h_ref, atol=3e-2, rtol=3e-2), "h_next mismatch"
    assert jnp.allclose(c_next, c_ref, atol=3e-2, rtol=3e-2), "c_next mismatch"

    print("KERNEL_OK")
</pallas_src>

<mosaic_0001>
module attributes {stable_mosaic.version = 11 : i64} {
  func.func @_convlstm_kernel(%arg0: i32, %arg1: i32, %arg2: memref<1x1x128x160xbf16, #tpu.memory_space<vmem>>, %arg3: memref<3x128x128xbf16, #tpu.memory_space<vmem>>, %arg4: memref<1x32x128xf32, #tpu.memory_space<vmem>>, %arg5: memref<1x32x128xbf16, #tpu.memory_space<vmem>>, %arg6: memref<1x32x128xf32, #tpu.memory_space<vmem>>) attributes {dimension_semantics = [#tpu.dimension_semantics<parallel>, #tpu.dimension_semantics<parallel>], iteration_bounds = array<i64: 2, 2>, scalar_prefetch = 0 : i64, scratch_operands = 0 : i64, tpu.core_type = #tpu.core_type<tc>, window_params = [{transform_indices = @transform_0, window_bounds = array<i64: 1, 1, 128, 160>}, {pipeline_mode = #tpu.pipeline_mode<synchronous>, transform_indices = @transform_1, window_bounds = array<i64: 3, 128, 128>}, {transform_indices = @transform_2, window_bounds = array<i64: 1, 32, 128>}, {transform_indices = @transform_3, window_bounds = array<i64: 1, 32, 128>}, {transform_indices = @transform_4, window_bounds = array<i64: 1, 32, 128>}]} {
    %c0 = arith.constant 0 : index
    %c0_0 = arith.constant 0 : index
    %c0_1 = arith.constant 0 : index
    %0 = vector.load %arg3[%c0, %c0_0, %c0_1] : memref<3x128x128xbf16, #tpu.memory_space<vmem>>, vector<1x128x128xbf16>
    %1 = vector.shape_cast %0 : vector<1x128x128xbf16> to vector<128x128xbf16>
    %c0_2 = arith.constant 0 : index
    %c0_3 = arith.constant 0 : index
    %c0_4 = arith.constant 0 : index
    %c0_5 = arith.constant 0 : index
    %2 = vector.load %arg2[%c0_2, %c0_3, %c0_4, %c0_5] : memref<1x1x128x160xbf16, #tpu.memory_space<vmem>>, vector<1x1x128x128xbf16>
    %3 = vector.shape_cast %2 : vector<1x1x128x128xbf16> to vector<128x128xbf16>
    %cst = arith.constant dense<0.000000e+00> : vector<128x128xf32>
    %4 = tpu.matmul %1, %3, %cst {dimension_numbers = #tpu.dot_dimension_numbers<[1], [0], [0], [1], [0, 0, 1, 1], [], []>} : vector<128x128xbf16>, vector<128x128xbf16>, vector<128x128xf32> -> vector<128x128xf32>
    %c1 = arith.constant 1 : index
    %c0_6 = arith.constant 0 : index
    %c0_7 = arith.constant 0 : index
    %5 = vector.load %arg3[%c1, %c0_6, %c0_7] : memref<3x128x128xbf16, #tpu.memory_space<vmem>>, vector<1x128x128xbf16>
    %6 = vector.shape_cast %5 : vector<1x128x128xbf16> to vector<128x128xbf16>
    %c0_8 = arith.constant 0 : index
    %c0_9 = arith.constant 0 : index
    %c0_10 = arith.constant 0 : index
    %c16 = arith.constant 16 : index
    %7 = vector.load %arg2[%c0_8, %c0_9, %c0_10, %c16] : memref<1x1x128x160xbf16, #tpu.memory_space<vmem>>, vector<1x1x128x128xbf16>
    %8 = vector.shape_cast %7 : vector<1x1x128x128xbf16> to vector<128x128xbf16>
    %cst_11 = arith.constant dense<0.000000e+00> : vector<128x128xf32>
    %9 = tpu.matmul %6, %8, %cst_11 {dimension_numbers = #tpu.dot_dimension_numbers<[1], [0], [0], [1], [0, 0, 1, 1], [], []>} : vector<128x128xbf16>, vector<128x128xbf16>, vector<128x128xf32> -> vector<128x128xf32>
    %10 = arith.addf %4, %9 : vector<128x128xf32>
    %c2 = arith.constant 2 : index
    %c0_12 = arith.constant 0 : index
    %c0_13 = arith.constant 0 : index
    %11 = vector.load %arg3[%c2, %c0_12, %c0_13] : memref<3x128x128xbf16, #tpu.memory_space<vmem>>, vector<1x128x128xbf16>
    %12 = vector.shape_cast %11 : vector<1x128x128xbf16> to vector<128x128xbf16>
    %c0_14 = arith.constant 0 : index
    %c0_15 = arith.constant 0 : index
    %c0_16 = arith.constant 0 : index
    %c32 = arith.constant 32 : index
    %13 = vector.load %arg2[%c0_14, %c0_15, %c0_16, %c32] : memref<1x1x128x160xbf16, #tpu.memory_space<vmem>>, vector<1x1x128x128xbf16>
    %14 = vector.shape_cast %13 : vector<1x1x128x128xbf16> to vector<128x128xbf16>
    %cst_17 = arith.constant dense<0.000000e+00> : vector<128x128xf32>
    %15 = tpu.matmul %12, %14, %cst_17 {dimension_numbers = #tpu.dot_dimension_numbers<[1], [0], [0], [1], [0, 0, 1, 1], [], []>} : vector<128x128xbf16>, vector<128x128xbf16>, vector<128x128xf32> -> vector<128x128xf32>
    %16 = arith.addf %10, %15 : vector<128x128xf32>
    %17 = vector.extract_strided_slice %16 {offsets = [0, 0], sizes = [32, 128], strides = [1, 1]} : vector<128x128xf32> to vector<32x128xf32>
    %cst_18 = arith.constant 5.000000e-01 : f32
    %18 = vector.broadcast %cst_18 : f32 to vector<32x128xf32>
    %19 = arith.mulf %18, %17 : vector<32x128xf32>
    %20 = math.tanh %19 : vector<32x128xf32>
    %cst_19 = arith.constant 5.000000e-01 : f32
    %21 = vector.broadcast %cst_19 : f32 to vector<32x128xf32>
    %22 = arith.mulf %21, %20 : vector<32x128xf32>
    %cst_20 = arith.constant 5.000000e-01 : f32
    %23 = vector.broadcast %cst_20 : f32 to vector<32x128xf32>
    %24 = arith.addf %22, %23 : vector<32x128xf32>
    %25 = vector.extract_strided_slice %16 {offsets = [32, 0], sizes = [32, 128], strides = [1, 1]} : vector<128x128xf32> to vector<32x128xf32>
    %cst_21 = arith.constant 5.000000e-01 : f32
    %26 = vector.broadcast %cst_21 : f32 to vector<32x128xf32>
    %27 = arith.mulf %26, %25 : vector<32x128xf32>
    %28 = math.tanh %27 : vector<32x128xf32>
    %cst_22 = arith.constant 5.000000e-01 : f32
    %29 = vector.broadcast %cst_22 : f32 to vector<32x128xf32>
    %30 = arith.mulf %29, %28 : vector<32x128xf32>
    %cst_23 = arith.constant 5.000000e-01 : f32
    %31 = vector.broadcast %cst_23 : f32 to vector<32x128xf32>
    %32 = arith.addf %30, %31 : vector<32x128xf32>
    %33 = vector.extract_strided_slice %16 {offsets = [64, 0], sizes = [32, 128], strides = [1, 1]} : vector<128x128xf32> to vector<32x128xf32>
    %cst_24 = arith.constant 5.000000e-01 : f32
    %34 = vector.broadcast %cst_24 : f32 to vector<32x128xf32>
    %35 = arith.mulf %34, %33 : vector<32x128xf32>
    %36 = math.tanh %35 : vector<32x128xf32>
    %cst_25 = arith.constant 5.000000e-01 : f32
    %37 = vector.broadcast %cst_25 : f32 to vector<32x128xf32>
    %38 = arith.mulf %37, %36 : vector<32x128xf32>
    %cst_26 = arith.constant 5.000000e-01 : f32
    %39 = vector.broadcast %cst_26 : f32 to vector<32x128xf32>
    %40 = arith.addf %38, %39 : vector<32x128xf32>
    %41 = vector.extract_strided_slice %16 {offsets = [96, 0], sizes = [32, 128], strides = [1, 1]} : vector<128x128xf32> to vector<32x128xf32>
    %42 = math.tanh %41 : vector<32x128xf32>
    %c0_27 = arith.constant 0 : index
    %c0_28 = arith.constant 0 : index
    %c0_29 = arith.constant 0 : index
    %43 = vector.load %arg4[%c0_27, %c0_28, %c0_29] : memref<1x32x128xf32, #tpu.memory_space<vmem>>, vector<1x32x128xf32>
    %44 = vector.shape_cast %43 : vector<1x32x128xf32> to vector<32x128xf32>
    %45 = arith.mulf %32, %44 : vector<32x128xf32>
    %46 = arith.mulf %24, %42 : vector<32x128xf32>
    %47 = arith.addf %45, %46 : vector<32x128xf32>
    %48 = math.tanh %47 : vector<32x128xf32>
    %49 = arith.mulf %40, %48 : vector<32x128xf32>
    %50 = arith.truncf %49 : vector<32x128xf32> to vector<32x128xbf16>
    %c0_30 = arith.constant 0 : index
    %c0_31 = arith.constant 0 : index
    %c0_32 = arith.constant 0 : index
    %51 = vector.load %arg5[%c0_30, %c0_31, %c0_32] : memref<1x32x128xbf16, #tpu.memory_space<vmem>>, vector<1x32x128xbf16>
    %52 = vector.shape_cast %51 : vector<1x32x128xbf16> to vector<32x128xbf16>
    %53 = vector.shape_cast %50 : vector<32x128xbf16> to vector<1x32x128xbf16>
    tpu.vector_store %arg5[%c0_30, %c0_31, %c0_32], %53 {strides = array<i32>} : memref<1x32x128xbf16, #tpu.memory_space<vmem>>, vector<1x32x128xbf16>,
    %c0_33 = arith.constant 0 : index
    %c0_34 = arith.constant 0 : index
    %c0_35 = arith.constant 0 : index
    %54 = vector.load %arg6[%c0_33, %c0_34, %c0_35] : memref<1x32x128xf32, #tpu.memory_space<vmem>>, vector<1x32x128xf32>
    %55 = vector.shape_cast %54 : vector<1x32x128xf32> to vector<32x128xf32>
    %56 = vector.shape_cast %47 : vector<32x128xf32> to vector<1x32x128xf32>
    tpu.vector_store %arg6[%c0_33, %c0_34, %c0_35], %56 {strides = array<i32>} : memref<1x32x128xf32, #tpu.memory_space<vmem>>, vector<1x32x128xf32>,
    return
  }
  func.func @transform_0(%arg0: i32, %arg1: i32) -> (i32, i32, i32, i32) {
    %c0_i32 = arith.constant 0 : i32
    %c0_i32_0 = arith.constant 0 : i32
    %c0_i32_1 = arith.constant 0 : i32
    return %arg0, %arg1, %c0_i32, %c0_i32_0 : i32, i32, i32, i32
  }
  func.func @transform_1(%arg0: i32, %arg1: i32) -> (i32, i32, i32) {
    %c0_i32 = arith.constant 0 : i32
    %c0_i32_0 = arith.constant 0 : i32
    %c0_i32_1 = arith.constant 0 : i32
    %c0_i32_2 = arith.constant 0 : i32
    return %c0_i32, %c0_i32_0, %c0_i32_1 : i32, i32, i32
  }
  func.func @transform_2(%arg0: i32, %arg1: i32) -> (i32, i32, i32) {
    %c0_i32 = arith.constant 0 : i32
    %c0_i32_0 = arith.constant 0 : i32
    return %arg0, %c0_i32, %arg1 : i32, i32, i32
  }
  func.func @transform_3(%arg0: i32, %arg1: i32) -> (i32, i32, i32) {
    %c0_i32 = arith.constant 0 : i32
    %c0_i32_0 = arith.constant 0 : i32
    return %arg0, %c0_i32, %arg1 : i32, i32, i32
  }
  func.func @transform_4(%arg0: i32, %arg1: i32) -> (i32, i32, i32) {
    %c0_i32 = arith.constant 0 : i32
    %c0_i32_0 = arith.constant 0 : i32
    return %arg0, %c0_i32, %arg1 : i32, i32, i32
  }
}

</mosaic_0001>

<bundles_post_ra>
// kernel: conv_lstm_cell.1
= control target key start
LH: loop header
LB: loop body
LE: loop exit
PB: predicated region body
PF: predicated region fallthrough
CT: control target
= control target key end

     0   :  { %s1933_s15 = smov 0   ;;  %s1935_s16 = smov 0   ;;  %s2211_s0 = inlined_call_operand.vmem [shape: bf16[2,2,128,160], index: 0, kind: input, shape index: {}]   ;;  %s2212_s1 = inlined_call_operand.vmem [shape: bf16[3,128,128], index: 1, kind: input, shape index: {}]   ;;  %s2213_s2 = inlined_call_operand.vmem [shape: f32[2,32,256], index: 2, kind: input, shape index: {}, may-alias: {2,4}]   ;;  %s2214_s3 = inlined_call_operand.vmem [shape: bf16[2,32,256], index: 3, kind: output, shape index: {0}]   ;;  %s2215_s4 = inlined_call_operand.vmem [shape: f32[2,32,256], index: 4, kind: output, shape index: {1}, may-alias: {2,4}]  }
   0x1   :  { %s1937_s17 = smov 0   ;;  %s1939_s18 = smov 0  }
   0x2   :  { %s1941_s19 = smov 0   ;;  %s1943_s20 = smov 0  }
   0x3   :  { %s1945_s21 = smov 0  }
   0x4 LB: > { %s24_s22 = sadd.s32 1, %s1896_s19  ;;  %s27_s23 = sadd.s32 1, %s1900_s20  ;;  %s1904_s21 = sphi %s1945_s21, %s15_s21   ;;  %s1900_s20 = sphi %s1943_s20, %s2222_s20   ;;  %s1896_s19 = sphi %s1941_s19, %s2221_s19   ;;  %s1892_s18 = sphi %s1939_s18, %s2220_s18   ;;  %s1888_s17 = sphi %s1937_s17, %s2219_s17   ;;  %s1884_s16 = sphi %s1935_s16, %s2218_s16   ;;  %s1880_s15 = sphi %s1933_s15, %s2217_s15  }
   0x5   : > { %p25_p0 = scmp.ge.s32.totalorder %s24_s22, 2  ;;  %s1383_s24 = sadd.s32 4294967295, %s1904_s21  }
   0x6   : > { %p92_p1 = scmp.ne.s32.totalorder %s1884_s16, %s1880_s15  ;;  %p93_p2 = scmp.eq.s32.totalorder %s1904_s21, 0 }
   0x7   : > { %s2224_s22 = smov (%p25_p0, %s24_s22), 0  ;;  %s2226_s23 = smov (!%p25_p0, %s27_s23), %s1900_s20 }
   0x8   : > { %p29_p3 = scmp.ge.s32.totalorder %s2226_s23, 2  ;;  %p124_p4 = scmp.eq.s32.totalorder %s1383_s24, 3 }
   0x9   : > { %s81_s25 = ssub.s32 %s1896_s19, %s2224_s22  ;;  %p94_p5 = por %p93_p2, %p92_p1 }
   0xa   : > { %s2228_s23 = smov (%p29_p3, %s2226_s23), 0  ;;  %p1981_p6 = por %p124_p4, %p92_p1 }
   0xb   : > { %s80_s27 = ssub.s32 %s1900_s20, %s2228_s23  ;;  %s85_s29 = sadd.s32 1, %s1884_s16 }
   0xc   : > { %s82_s28 = sor.u32 %s81_s25, %s80_s27  ;;  %p1386_p8 = scmp.ge.s32.totalorder %s1904_s21, 4 }
   0xd   : > { %p83_p7 = scmp.eq.s32.totalorder %s82_s28, 0 }
   0xe   : > { %177 = sbr.rel (%p1386_p8) target bundleno = 29 (0x1d), region = 20 }
   0xf   : > { %s1989_s30 = scalar_select %p83_p7, %s1884_s16, %s85_s29  }
  0x15   : > { %192 = sbr.rel (!%p94_p5) target bundleno = 29 (0x1d), region = 28  ;;  %s194_s5 = sand.u32 (%p94_p5), 1, %s1884_s16  }
  0x16   : > { %s1388_s6 = sshll.u32 (%p94_p5), %s1900_s20, 3  ;;  %s1387_s7 = sshll.u32 (%p94_p5), %s194_s5, 5 }
  0x17   : > { %s198_s8 = sadd.s32 (%p94_p5), %s1896_s19, %s1388_s6  ;;  %s196_s13 = scalar_lea.vmem (%p94_p5), [#allocation2], %s1387_s7 }
  0x18   : > { %s1389_s9 = sshll.u32 (%p94_p5), %s198_s8, 3 }
  0x19   : > { %s200_s12 = scalar_lea.vmem (%p94_p5), %s2213_s2, %s1389_s9 }
  0x1a   : > { %v234_v0 = vld [vmem:[%s200_s12] sm:$0xff] (%p94_p5)  ;;  %v236_v1 = vld [vmem:[%s200_s12 + $0x10] sm:$0xff] (%p94_p5) }
  0x1b   : > { %v238_v2 = vld [vmem:[%s200_s12 + $0x20] sm:$0xff] (%p94_p5)  ;;  %235 = vst [vmem:[%s196_s13] sm:$0xff] (%p94_p5), %v234_v0  ;;  %237 = vst [vmem:[%s196_s13 + $0x8] sm:$0xff] (%p94_p5), %v236_v1  ;;  %v240_v3 = vld [vmem:[%s200_s12 + $0x30] sm:$0xff] (%p94_p5) }
  0x1c   : > { %239 = vst [vmem:[%s196_s13 + $0x10] sm:$0xff] %v238_v2  ;;  %241 = vst [vmem:[%s196_s13 + $0x18] sm:$0xff] %v240_v3 }
  0x1d PF: > { %p1390_p9 = scmp.ge.s32.totalorder %s1904_s21, 1  ;;  %p246_p10 = scmp.lt.s32.totalorder %s1904_s21, 5 }
  0x1f   : > { %p247_p11 = pnand %p1390_p9, %p246_p10 }
  0x20   : > { %p290_p12 = scmp.lt.s32.totalorder (!%p247_p11), %s1892_s18, 1  ;;  %p292_p13 = scmp.lt.s32.totalorder (!%p247_p11), %s1888_s17, 1  ;;  %v1786_v19 = vld [vmem:[%s2212_s1] sm:$0xff] (!%p247_p11)   ;;  %v1787_v30 = vld [vmem:[%s2212_s1 + $0x8] sm:$0xff] (!%p247_p11)   ;;  %v1790_v31 = vld [vmem:[%s2212_s1 + $0x10] sm:$0xff] (!%p247_p11)   ;;  %vm509_vm0 = vcmask (!%p247_p11), 916480  }
  0x21   : > { %250 = sbr.rel (%p247_p11) target bundleno = 506 (0x1fa), region = 66  ;;  %s1906_s8 = smov (!%p247_p11), 112   ;;  %1600 = vmatprep.mubr.bf16.mxu0 (!%p247_p11), %v1786_v19  ;;  %v1788_v24 = vld [vmem:[%s2212_s1 + $0x40] sm:$0xff] (!%p247_p11)   ;;  %v1791_v32 = vld [vmem:[%s2212_s1 + $0x18] sm:$0xff] (!%p247_p11)   ;;  %v1795_v34 = vld [vmem:[%s2212_s1 + $0x28] sm:$0xff] (!%p247_p11)   ;;  %vm913_vm1 = vcmask (!%p247_p11), 785408  }
  0x22   : > { %1568 = vmatprep.mubr.bf16.mxu1 (!%p247_p11), %v1788_v24  ;;  %s1907_s13 = smov (!%p247_p11), 96   ;;  %v1794_v33 = vld [vmem:[%s2212_s1 + $0x20] sm:$0xff] (!%p247_p11)   ;;  %v1798_v35 = vld [vmem:[%s2212_s1 + $0x30] sm:$0xff] (!%p247_p11)   ;;  %v1799_v36 = vld [vmem:[%s2212_s1 + $0x38] sm:$0xff] (!%p247_p11)  }
  0x23   : > { %v1802_v37 = vld [vmem:[%s2212_s1 + $0x80] sm:$0xff] (!%p247_p11)   ;;  %v1789_v2 = vld [vmem:[%s2212_s1 + $0x48] sm:$0xff] (!%p247_p11)  }
  0x28   : > { %s291_s14 = scalar_select %p290_p12, %s1892_s18, 1 }
  0x29   : > { %s293_s24 = scalar_select %p292_p13, %s1888_s17, 1 }
  0x2a   : > { %s1395_s25 = sshll.u32 %s291_s14, 6  ;;  %s253_s14 = sand.u32 1, %s1880_s15  }
  0x2b   : > { %s1394_s27 = sshll.u32 %s293_s24, 5  ;;  %s2160_s24 = sshll.u32 %s253_s14, 5 }
  0x2c   : > { %s296_s28 = sadd.s32 %s1395_s25, %s1394_s27  ;;  %s2164_s25 = scalar_lea.vmem [#allocation4], %s2160_s24 }
  0x2d   : > { %s1396_s29 = sshll.u32 %s296_s28, 2  ;;  %s1392_s27 = sshll.u32 %s253_s14, 4 }
  0x2e   : > { %s2007_s7 = scalar_lea.vmem %s2211_s0, %s1396_s29  ;;  %s283_s28 = scalar_lea.vmem [#allocation3], %s1392_s27 }
  0x2f   : > { %v2010_v4 = vld [vmem:[%s2007_s7 + $0x10] ss:$8 sps:$4 sm:$0xff]   ;;  %v1756_v5 = vld [vmem:[%s2007_s7 + $0x14] ss:$8 sps:$4 sm:$0xff]   ;;  %v1757_v6 = vld [vmem:[%s2007_s7] ss:$8 sps:$4 sm:$0xff]  }
  0x30   : > { %481 = vrot.lane.b32.xlu1 %v2010_v4, %s1906_s8  ;;  %v1759_v7 = vld [vmem:[%s2007_s7 + $0x4] ss:$8 sps:$4 sm:$0xff]   ;;  %477 = vrot.lane.b32.xlu0 %v1757_v6, %s1906_s8  ;;  %v1762_v9 = vld [vmem:[%s2007_s7 + $0x20] ss:$8 sps:$4 sm:$0xff]   ;;  %s1483_s29 = sshll.u32 (%p1981_p6), %s1892_s18, 3 }
  0x31   : > { %v1760_v8 = vld [vmem:[%s2007_s7 + $0x24] ss:$8 sps:$4 sm:$0xff]   ;;  %v1763_v10 = vld [vmem:[%s2007_s7 + $0x34] ss:$8 sps:$4 sm:$0xff]   ;;  %v1765_v11 = vld [vmem:[%s2007_s7 + $0x30] ss:$8 sps:$4 sm:$0xff]   ;;  %s1155_s15 = sadd.s32 (%p1981_p6), %s1888_s17, %s1483_s29 }
  0x32   : > { %v1778_v12 = vld [vmem:[%s2007_s7] ss:$8 sps:$4 sm:$0xff]   ;;  %v1779_v13 = vld [vmem:[%s2007_s7 + $0x10] ss:$8 sps:$4 sm:$0xff]   ;;  %v1766_v14 = vld [vmem:[%s2007_s7 + $0x44] ss:$8 sps:$4 sm:$0xff]  }
  0x33   : > { %1584 = vmatprep.subr.bf16.mxu0 %v1778_v12  ;;  %v1780_v15 = vld [vmem:[%s2007_s7 + $0x20] ss:$8 sps:$4 sm:$0xff]   ;;  %v1769_v17 = vld [vmem:[%s2007_s7 + $0x54] ss:$8 sps:$4 sm:$0xff]   ;;  %v1771_v18 = vld [vmem:[%s2007_s7 + $0x50] ss:$8 sps:$4 sm:$0xff]  }
  0x34   : > { %483 = vrot.lane.b32.xlu1 %v1756_v5, %s1906_s8  ;;  %479 = vrot.lane.b32.xlu0 %v1759_v7, %s1906_s8  ;;  %v1768_v16 = vld [vmem:[%s2007_s7 + $0x40] ss:$8 sps:$4 sm:$0xff]   ;;  %v1781_v20 = vld [vmem:[%s2007_s7 + $0x30] ss:$8 sps:$4 sm:$0xff]   ;;  %s1484_s5 = sshll.u32 (%p1981_p6), %s1155_s15, 2 }
  0x35   : > { %1585 = vmatpush3.bf16.msra.mxu0 %v1778_v12  ;;  %v1772_v21 = vld [vmem:[%s2007_s7 + $0x64] ss:$8 sps:$4 sm:$0xff]   ;;  %v1782_v22 = vld [vmem:[%s2007_s7 + $0x40] ss:$8 sps:$4 sm:$0xff]   ;;  %v1783_v25 = vld [vmem:[%s2007_s7 + $0x50] ss:$8 sps:$4 sm:$0xff]  }
  0x36   : > { %1586 = vmatprep.subr.bf16.mxu0 %v1779_v13  ;;  %v1774_v23 = vld [vmem:[%s2007_s7 + $0x60] ss:$8 sps:$4 sm:$0xff]   ;;  %v1775_v26 = vld [vmem:[%s2007_s7 + $0x74] ss:$8 sps:$4 sm:$0xff]   ;;  %v1777_v28 = vld [vmem:[%s2007_s7 + $0x70] ss:$8 sps:$4 sm:$0xff]  }
  0x37   : > { %v1784_v27 = vld [vmem:[%s2007_s7 + $0x60] ss:$8 sps:$4 sm:$0xff]   ;;  %v1785_v29 = vld [vmem:[%s2007_s7 + $0x70] ss:$8 sps:$4 sm:$0xff]  }
  0x38   : > { %487 = vrot.lane.b32.xlu1 %v1760_v8, %s1906_s8  ;;  %485 = vrot.lane.b32.xlu0 %v1762_v9, %s1906_s8  ;;  %v1796_v12 = vld [vmem:[%s2212_s1 + $0x60] sm:$0xff]  }
  0x39   : > { %1587 = vmatpush3.bf16.msra.mxu0 %v1779_v13 }
  0x3a   : > { %1588 = vmatprep.subr.bf16.mxu0 %v1780_v15 }
  0x3c   : > { %491 = vrot.lane.b32.xlu1 %v1763_v10, %s1906_s8  ;;  %489 = vrot.lane.b32.xlu0 %v1765_v11, %s1906_s8 }
  0x3d   : > { %1589 = vmatpush3.bf16.msra.mxu0 %v1780_v15 }
  0x3e   : > { %1590 = vmatprep.subr.bf16.mxu0 %v1781_v20 }
  0x40   : > { %495 = vrot.lane.b32.xlu1 %v1766_v14, %s1906_s8  ;;  %493 = vrot.lane.b32.xlu0 %v1768_v16, %s1906_s8 }
  0x41   : > { %1591 = vmatpush3.bf16.msra.mxu0 %v1781_v20  ;;  %v1800_v20 = vld [vmem:[%s2212_s1 + $0x70] sm:$0xff]  }
  0x42   : > { %1592 = vmatprep.subr.bf16.mxu0 %v1782_v22 }
  0x44   : > { %499 = vrot.lane.b32.xlu1 %v1769_v17, %s1906_s8  ;;  %497 = vrot.lane.b32.xlu0 %v1771_v18, %s1906_s8 }
  0x45   : > { %1593 = vmatpush3.bf16.msra.mxu0 %v1782_v22 }
  0x46   : > { %1594 = vmatprep.subr.bf16.mxu0 %v1783_v25 }
  0x48   : > { %503 = vrot.lane.b32.xlu1 %v1772_v21, %s1906_s8  ;;  %501 = vrot.lane.b32.xlu0 %v1774_v23, %s1906_s8 }
  0x49   : > { %1595 = vmatpush3.bf16.msra.mxu0 %v1783_v25 }
  0x4a   : > { %1596 = vmatprep.subr.bf16.mxu0 %v1784_v27 }
  0x4c   : > { %883 = vrot.lane.b32.xlu1 %v1759_v7, %s1907_s13  ;;  %881 = vrot.lane.b32.xlu0 %v1757_v6, %s1907_s13 }
  0x4d   : > { %1597 = vmatpush3.bf16.msra.mxu0 %v1784_v27 }
  0x4e   : > { %1598 = vmatprep.subr.bf16.mxu0 %v1785_v29 }
  0x50   : > { %507 = vrot.lane.b32.xlu1 %v1775_v26, %s1906_s8  ;;  %505 = vrot.lane.b32.xlu0 %v1777_v28, %s1906_s8  ;;  %s1157_s8 = scalar_lea.vmem (%p1981_p6), %s2214_s3, %s1484_s5 }
  0x51   : > { %1599 = vmatpush3.bf16.msra.mxu0 %v1785_v29 }
  0x54   : > { %887 = vrot.lane.b32.xlu1 %v1756_v5, %s1907_s13  ;;  %885 = vrot.lane.b32.xlu0 %v2010_v4, %s1907_s13  ;;  %v1792_v4 = vld [vmem:[%s2212_s1 + $0x50] sm:$0xff]  }
  0x55   : > { %1601 = vmatmul.mubr.bf16.vlgmr.msra.gmra.mrb[0].mxu0 %v1787_v30  ;;  %v1803_v30 = vld [vmem:[%s2212_s1 + $0x88] sm:$0xff]  }
  0x56   : > { %1604 = vmatprep.mubr.bf16.mxu0 %v1790_v31  ;;  %v1806_v31 = vld [vmem:[%s2212_s1 + $0x90] sm:$0xff]  }
  0x58   : > { %891 = vrot.lane.b32.xlu1 %v1760_v8, %s1907_s13  ;;  %889 = vrot.lane.b32.xlu0 %v1762_v9, %s1907_s13 }
  0x5c   : > { %895 = vrot.lane.b32.xlu1 %v1763_v10, %s1907_s13  ;;  %893 = vrot.lane.b32.xlu0 %v1765_v11, %s1907_s13  ;;  %v1793_v10 = vld [vmem:[%s2212_s1 + $0x58] sm:$0xff]  }
  0x5d   : > { %1605 = vmatmul.mubr.bf16.gmra.mrb[4].mxu0 %v1791_v32  ;;  %v1805_v32 = vld [vmem:[%s2212_s1 + $0xa8] sm:$0xff]  }
  0x5e   : > { %1608 = vmatprep.mubr.bf16.mxu0 %v1794_v33  ;;  %v1808_v33 = vld [vmem:[%s2212_s1 + $0xb0] sm:$0xff]  }
  0x60   : > { %899 = vrot.lane.b32.xlu1 %v1766_v14, %s1907_s13  ;;  %897 = vrot.lane.b32.xlu0 %v1768_v16, %s1907_s13 }
  0x64   : > { %903 = vrot.lane.b32.xlu1 %v1769_v17, %s1907_s13  ;;  %901 = vrot.lane.b32.xlu0 %v1771_v18, %s1907_s13  ;;  %v1797_v18 = vld [vmem:[%s2212_s1 + $0x68] sm:$0xff]  }
  0x65   : > { %1609 = vmatmul.mubr.bf16.gmra.mrb[8].mxu0 %v1795_v34  ;;  %v1807_v34 = vld [vmem:[%s2212_s1 + $0x98] sm:$0xff]  }
  0x66   : > { %1612 = vmatprep.mubr.bf16.mxu0 %v1798_v35  ;;  %v1809_v35 = vld [vmem:[%s2212_s1 + $0xb8] sm:$0xff]  }
  0x68   : > { %907 = vrot.lane.b32.xlu1 %v1772_v21, %s1907_s13  ;;  %905 = vrot.lane.b32.xlu0 %v1774_v23, %s1907_s13 }
  0x6c   : > { %911 = vrot.lane.b32.xlu1 %v1775_v26, %s1907_s13  ;;  %909 = vrot.lane.b32.xlu0 %v1777_v28, %s1907_s13  ;;  %v1801_v26 = vld [vmem:[%s2212_s1 + $0x78] sm:$0xff]   ;;  %v1804_v28 = vld [vmem:[%s2212_s1 + $0xa0] sm:$0xff]   ;;  %s255_s13 = scalar_lea.vmem [#allocation2], %s2160_s24 }
  0x6d   : > { %1613 = vmatmul.mubr.bf16.gmra.mrb[12].mxu0 %v1799_v36 }
  0x6e   : > { %1632 = vmatprep.mubr.bf16.mxu0 %v1802_v37 }
  0xa2   : > { %v482_v38 = vpop.permute.xlu1 %481  ;;  %v478_v39 = vpop.permute.xlu0 %477 }
  0xa6   : > { %v484_v40 = vpop.permute.xlu1 %483  ;;  %v480_v41 = vpop.permute.xlu0 %479 }
  0xa7   : > { %v510_v42 = vsel %vm509_vm0, %v478_v39, %v480_v41  ;;  %v511_v44 = vsel %vm509_vm0, %v482_v38, %v484_v40 }
  0xa8   : > { %1552 = vmatprep.subr.bf16.mxu1 %v510_v42 }
  0xa9   : > { %1553 = vmatpush3.bf16.msra.mxu1 %v510_v42 }
  0xaa   : > { %v488_v43 = vpop.permute.xlu1 %487  ;;  %1554 = vmatprep.subr.bf16.mxu1 %v511_v44  ;;  %v486_v45 = vpop.permute.xlu0 %485 }
  0xab   : > { %v512_v47 = vsel %vm509_vm0, %v486_v45, %v488_v43 }
  0xad   : > { %1555 = vmatpush3.bf16.msra.mxu1 %v511_v44 }
  0xae   : > { %v492_v46 = vpop.permute.xlu1 %491  ;;  %1556 = vmatprep.subr.bf16.mxu1 %v512_v47  ;;  %v490_v48 = vpop.permute.xlu0 %489 }
  0xaf   : > { %v513_v50 = vsel %vm509_vm0, %v490_v48, %v492_v46 }
  0xb1   : > { %1557 = vmatpush3.bf16.msra.mxu1 %v512_v47 }
  0xb2   : > { %v496_v49 = vpop.permute.xlu1 %495  ;;  %1558 = vmatprep.subr.bf16.mxu1 %v513_v50  ;;  %v494_v51 = vpop.permute.xlu0 %493 }
  0xb3   : > { %v514_v53 = vsel %vm509_vm0, %v494_v51, %v496_v49 }
  0xb5   : > { %1559 = vmatpush3.bf16.msra.mxu1 %v513_v50 }
  0xb6   : > { %v500_v52 = vpop.permute.xlu1 %499  ;;  %1560 = vmatprep.subr.bf16.mxu1 %v514_v53  ;;  %v498_v54 = vpop.permute.xlu0 %497 }
  0xb7   : > { %v515_v56 = vsel %vm509_vm0, %v498_v54, %v500_v52 }
  0xb9   : > { %1561 = vmatpush3.bf16.msra.mxu1 %v514_v53 }
  0xba   : > { %v504_v55 = vpop.permute.xlu1 %503  ;;  %1562 = vmatprep.subr.bf16.mxu1 %v515_v56  ;;  %v502_v57 = vpop.permute.xlu0 %501 }
  0xbb   : > { %v516_v59 = vsel %vm509_vm0, %v502_v57, %v504_v55 }
  0xbd   : > { %1563 = vmatpush3.bf16.msra.mxu1 %v515_v56 }
  0xbe   : > { %v884_v58 = vpop.permute.xlu1 %883  ;;  %1564 = vmatprep.subr.bf16.mxu1 %v516_v59  ;;  %v882_v60 = vpop.permute.xlu0 %881 }
  0xbf   : > { %v914_v61 = vsel %vm913_vm1, %v882_v60, %v884_v58 }
  0xc0   : > { %1616 = vmatprep.subr.bf16.mxu0 %v914_v61 }
  0xc1   : > { %1565 = vmatpush3.bf16.msra.mxu1 %v516_v59  ;;  %1617 = vmatpush3.bf16.msra.mxu0 %v914_v61 }
  0xc2   : > { %v508_v62 = vpop.permute.xlu1 %507  ;;  %v506_v63 = vpop.permute.xlu0 %505 }
  0xc3   : > { %v517_v0 = vsel %vm509_vm0, %v506_v63, %v508_v62 }
  0xc4   : > { %1566 = vmatprep.subr.bf16.mxu1 %v517_v0 }
  0xc5   : > { %1567 = vmatpush3.bf16.msra.mxu1 %v517_v0 }
  0xc6   : > { %v888_v1 = vpop.permute.xlu1 %887  ;;  %1648 = vmatprep.subr.bf16.mxu1 %v914_v61  ;;  %v886_v3 = vpop.permute.xlu0 %885 }
  0xc7   : > { %v915_v5 = vsel %vm913_vm1, %v886_v3, %v888_v1 }
  0xc8   : > { %1569 = vmatmul.mubr.bf16.vlgmr.msra.gmra.mrb[0].mxu1 %v1789_v2  ;;  %1618 = vmatprep.subr.bf16.mxu0 %v915_v5 }
  0xc9   : > { %1656 = vmatpush3.bf16.msra.mxu1 %v914_v61  ;;  %1619 = vmatpush3.bf16.msra.mxu0 %v915_v5 }
  0xca   : > { %v892_v6 = vpop.permute.xlu1 %891  ;;  %1649 = vmatprep.subr.bf16.mxu1 %v915_v5  ;;  %v890_v7 = vpop.permute.xlu0 %889  ;;  %1572 = vmatprep.mubr.bf16.mxu1 %v1792_v4 }
  0xcb   : > { %v916_v8 = vsel %vm913_vm1, %v890_v7, %v892_v6 }
  0xcc   : > { %1620 = vmatprep.subr.bf16.mxu0 %v916_v8 }
  0xcd   : > { %1657 = vmatpush3.bf16.msra.mxu1 %v915_v5  ;;  %1621 = vmatpush3.bf16.msra.mxu0 %v916_v8 }
  0xce   : > { %v896_v9 = vpop.permute.xlu1 %895  ;;  %1650 = vmatprep.subr.bf16.mxu1 %v916_v8  ;;  %v894_v11 = vpop.permute.xlu0 %893 }
  0xcf   : > { %v917_v13 = vsel %vm913_vm1, %v894_v11, %v896_v9 }
  0xd0   : > { %1573 = vmatmul.mubr.bf16.gmra.mrb[4].mxu1 %v1793_v10  ;;  %1622 = vmatprep.subr.bf16.mxu0 %v917_v13 }
  0xd1   : > { %1658 = vmatpush3.bf16.msra.mxu1 %v916_v8  ;;  %1623 = vmatpush3.bf16.msra.mxu0 %v917_v13 }
  0xd2   : > { %v900_v14 = vpop.permute.xlu1 %899  ;;  %1651 = vmatprep.subr.bf16.mxu1 %v917_v13  ;;  %v898_v15 = vpop.permute.xlu0 %897  ;;  %1576 = vmatprep.mubr.bf16.mxu1 %v1796_v12 }
  0xd3   : > { %v918_v16 = vsel %vm913_vm1, %v898_v15, %v900_v14 }
  0xd4   : > { %1624 = vmatprep.subr.bf16.mxu0 %v918_v16 }
  0xd5   : > { %1659 = vmatpush3.bf16.msra.mxu1 %v917_v13  ;;  %1625 = vmatpush3.bf16.msra.mxu0 %v918_v16 }
  0xd6   : > { %v904_v17 = vpop.permute.xlu1 %903  ;;  %1652 = vmatprep.subr.bf16.mxu1 %v918_v16  ;;  %v902_v19 = vpop.permute.xlu0 %901 }
  0xd7   : > { %v919_v21 = vsel %vm913_vm1, %v902_v19, %v904_v17 }
  0xd8   : > { %1577 = vmatmul.mubr.bf16.gmra.mrb[8].mxu1 %v1797_v18  ;;  %1626 = vmatprep.subr.bf16.mxu0 %v919_v21 }
  0xd9   : > { %1660 = vmatpush3.bf16.msra.mxu1 %v918_v16  ;;  %1627 = vmatpush3.bf16.msra.mxu0 %v919_v21 }
  0xda   : > { %v908_v22 = vpop.permute.xlu1 %907  ;;  %1653 = vmatprep.subr.bf16.mxu1 %v919_v21  ;;  %v906_v23 = vpop.permute.xlu0 %905  ;;  %1580 = vmatprep.mubr.bf16.mxu1 %v1800_v20 }
  0xdb   : > { %v920_v24 = vsel %vm913_vm1, %v906_v23, %v908_v22 }
  0xdc   : > { %1628 = vmatprep.subr.bf16.mxu0 %v920_v24 }
  0xdd   : > { %1661 = vmatpush3.bf16.msra.mxu1 %v919_v21  ;;  %1629 = vmatpush3.bf16.msra.mxu0 %v920_v24 }
  0xde   : > { %v912_v25 = vpop.permute.xlu1 %911  ;;  %1654 = vmatprep.subr.bf16.mxu1 %v920_v24  ;;  %v910_v27 = vpop.permute.xlu0 %909 }
  0xdf   : > { %v921_v29 = vsel %vm913_vm1, %v910_v27, %v912_v25 }
  0xe0   : > { %1581 = vmatmul.mubr.bf16.gmra.mrb[12].mxu1 %v1801_v26  ;;  %1630 = vmatprep.subr.bf16.mxu0 %v921_v29 }
  0xe1   : > { %1662 = vmatpush3.bf16.msra.mxu1 %v920_v24  ;;  %1631 = vmatpush3.bf16.msra.mxu0 %v921_v29 }
  0xe2   : > { %1655 = vmatprep.subr.bf16.mxu1 %v921_v29  ;;  %1640 = vmatprep.mubr.bf16.mxu1 %v1804_v28 }
  0xe4   : > { %1633 = vmatmul.mubr.bf16.vlgmr.msra.gmra.mrb[0].mxu0 %v1803_v30 }
  0xe5   : > { %1663 = vmatpush3.bf16.msra.mxu1 %v921_v29  ;;  %1636 = vmatprep.mubr.bf16.mxu0 %v1806_v31 }
  0xe8   : > { %1641 = vmatmul.mubr.bf16.vlgmr.msra.gmra.mrb[16].mxu1 %v1805_v32 }
  0xe9   : > { %1644 = vmatprep.mubr.bf16.mxu1 %v1808_v33 }
  0xec   : > { %1637 = vmatmul.mubr.bf16.gmra.mrb[4].mxu0 %v1807_v34 }
  0xf0   : > { %1645 = vmatmul.mubr.bf16.gmra.mrb[20].mxu1 %v1809_v35 }
 0x138   : > { %v1610_v36 = vpop.f32.mrb[8].mxu0 }
 0x139   : > { %v785_v37 = vpop.f32.mrb[9].mxu0 }
 0x13a   : > { %v1611_v38 = vpop.f32.mrb[10].mxu0 }
 0x13b   : > { %v788_v39 = vpop.f32.mrb[11].mxu0 }
 0x140   : > { %v1614_v40 = vpop.f32.mrb[12].mxu0 }
 0x141   : > { %v801_v41 = vpop.f32.mrb[13].mxu0 }
 0x142   : > { %v1615_v42 = vpop.f32.mrb[14].mxu0 }
 0x143   : > { %v804_v43 = vpop.f32.mrb[15].mxu0 }
 0x19b   : > { %v1570_v44 = vpop.f32.mrb[0].mxu1 }
 0x19c   : > { %v560_v45 = vpop.f32.mrb[1].mxu1 }
 0x19d   : > { %v1571_v46 = vpop.f32.mrb[2].mxu1 }
 0x19e   : > { %v563_v47 = vpop.f32.mrb[3].mxu1 }
 0x1a3   : > { %v1574_v48 = vpop.f32.mrb[4].mxu1 }
 0x1a4   : > { %v576_v49 = vpop.f32.mrb[5].mxu1 }
 0x1a5   : > { %v1575_v50 = vpop.f32.mrb[6].mxu1 }
 0x1a6   : > { %v579_v51 = vpop.f32.mrb[7].mxu1 }
 0x1ab   : > { %v1578_v52 = vpop.f32.mrb[8].mxu1 }
 0x1ac   : > { %v794_v53 = vadd.f32 %v1610_v36, %v1578_v52  ;;  %v592_v54 = vpop.f32.mrb[9].mxu1 }
 0x1ad   : > { %v786_v55 = vadd.f32 %v785_v37, %v592_v54  ;;  %v1579_v56 = vpop.f32.mrb[10].mxu1 }
 0x1ae   : > { %v797_v57 = vadd.f32 %v1611_v38, %v1579_v56  ;;  %v595_v58 = vpop.f32.mrb[11].mxu1 }
 0x1af   : > { %v789_v59 = vadd.f32 %v788_v39, %v595_v58 }
 0x1b3   : > { %v1582_v60 = vpop.f32.mrb[12].mxu1 }
 0x1b4   : > { %v810_v61 = vadd.f32 %v1614_v40, %v1582_v60  ;;  %v608_v62 = vpop.f32.mrb[13].mxu1  ;;  %v1097_v60 = vld [vmem:[%s255_s13 + $0x10] sm:$0xff] }
 0x1b5   : > { %v802_v63 = vadd.f32 %v801_v41, %v608_v62  ;;  %v1583_v0 = vpop.f32.mrb[14].mxu1 }
 0x1b6   : > { %v813_v1 = vadd.f32 %v1615_v42, %v1583_v0  ;;  %v611_v2 = vpop.f32.mrb[15].mxu1 }
 0x1b7   : > { %v805_v3 = vadd.f32 %v804_v43, %v611_v2  ;;  %v1634_v4 = vpop.f32.mrb[0].mxu0 }
 0x1b8   : > { %v1664_v5 = vadd.f32 %v1634_v4, %v1570_v44  ;;  %v964_v6 = vpop.f32.mrb[1].mxu0 }
 0x1b9   : > { %v1665_v7 = vadd.f32 %v964_v6, %v560_v45  ;;  %v1635_v8 = vpop.f32.mrb[2].mxu0  ;;  %v1098_v6 = vld [vmem:[%s255_s13 + $0x18] sm:$0xff] }
 0x1ba   : > { %v1666_v9 = vadd.f32 %v1635_v8, %v1571_v46  ;;  %v967_v10 = vpop.f32.mrb[3].mxu0  ;;  %v1045_v13 = vmul.f32 0.5, %v1664_v5 }
 0x1bb   : > { %v1667_v11 = vadd.f32 %v967_v10, %v563_v47  ;;  %v1642_v12 = vpop.f32.mrb[16].mxu1  ;;  %v1043_v16 = vmul.f32 0.5, %v1665_v7 }
 0x1bc   : > { %v1037_v14 = vadd.f32 %v1642_v12, %v794_v53  ;;  %v996_v15 = vpop.f32.mrb[17].mxu1  ;;  %v1046_v19 = vmul.f32 0.5, %v1666_v9  ;;  %1810 = vtanh.f32 %v1045_v13  ;;  %v1096_v12 = vld [vmem:[%s255_s13 + $0x8] sm:$0xff] }
 0x1bd   : > { %v1035_v17 = vadd.f32 %v996_v15, %v786_v55  ;;  %v1643_v18 = vpop.f32.mrb[18].mxu1  ;;  %v1044_v22 = vmul.f32 0.5, %v1667_v11  ;;  %1812 = vtanh.f32 %v1043_v16 }
 0x1be   : > { %v1038_v20 = vadd.f32 %v1643_v18, %v797_v57  ;;  %v999_v21 = vpop.f32.mrb[19].mxu1  ;;  %1814 = vtanh.f32 %v1046_v19  ;;  %v1077_v46 = vmul.f32 0.5, %v1037_v14 }
 0x1bf   : > { %v1036_v23 = vadd.f32 %v999_v21, %v789_v59  ;;  %v1638_v24 = vpop.f32.mrb[4].mxu0  ;;  %1816 = vtanh.f32 %v1044_v22 }
 0x1c0   : > { %v1668_v25 = vadd.f32 %v1638_v24, %v1574_v48  ;;  %v980_v26 = vpop.f32.mrb[5].mxu0  ;;  %v1075_v48 = vmul.f32 0.5, %v1035_v17 }
 0x1c1   : > { %v1669_v27 = vadd.f32 %v980_v26, %v576_v49  ;;  %v1639_v28 = vpop.f32.mrb[6].mxu0  ;;  %v1076_v54 = vmul.f32 0.5, %v1036_v23 }
 0x1c2   : > { %v1061_v29 = vmul.f32 0.5, %v1668_v25  ;;  %v1670_v30 = vadd.f32 %v1639_v28, %v1575_v50  ;;  %v983_v31 = vpop.f32.mrb[7].mxu0 }
 0x1c3   : > { %v1059_v32 = vmul.f32 0.5, %v1669_v27  ;;  %v1671_v33 = vadd.f32 %v983_v31, %v579_v51  ;;  %v1646_v34 = vpop.f32.mrb[20].mxu1  ;;  %v1078_v51 = vmul.f32 0.5, %v1038_v20 }
 0x1c4   : > { %1818 = vtanh.f32 %v1061_v29  ;;  %v1062_v35 = vmul.f32 0.5, %v1670_v30  ;;  %v1041_v36 = vadd.f32 %v1646_v34, %v810_v61  ;;  %v1012_v37 = vpop.f32.mrb[21].mxu1 }
 0x1c5   : > { %1820 = vtanh.f32 %v1059_v32  ;;  %v1060_v38 = vmul.f32 0.5, %v1671_v33  ;;  %v1039_v39 = vadd.f32 %v1012_v37, %v802_v63  ;;  %v1647_v40 = vpop.f32.mrb[22].mxu1 }
 0x1c6   : > { %1822 = vtanh.f32 %v1062_v35  ;;  %v1042_v41 = vadd.f32 %v1647_v40, %v813_v1  ;;  %v1015_v42 = vpop.f32.mrb[23].mxu1  ;;  %v1811_v44 = vpop.eup %1810  ;;  %v1095_v1 = vld [vmem:[%s255_s13] sm:$0xff] }
 0x1c7   : > { %1824 = vtanh.f32 %v1060_v38  ;;  %v1040_v43 = vadd.f32 %v1015_v42, %v805_v3  ;;  %v1813_v45 = vpop.eup %1812  ;;  %v1053_v50 = vmul.f32 0.5, %v1811_v44 }
 0x1c8   : > { %1826 = vtanh.f32 %v1041_v36  ;;  %v1815_v47 = vpop.eup %1814  ;;  %v1051_v53 = vmul.f32 0.5, %v1813_v45 }
 0x1c9   : > { %1828 = vtanh.f32 %v1039_v39  ;;  %v1817_v49 = vpop.eup %1816  ;;  %v1054_v56 = vmul.f32 0.5, %v1815_v47  ;;  %v1057_v63 = vadd.f32 0.5, %v1053_v50 }
 0x1ca   : > { %1830 = vtanh.f32 %v1042_v41  ;;  %v1052_v59 = vmul.f32 0.5, %v1817_v49  ;;  %v1055_v4 = vadd.f32 0.5, %v1051_v53 }
 0x1cb   : > { %1832 = vtanh.f32 %v1040_v43  ;;  %v1058_v9 = vadd.f32 0.5, %v1054_v56 }
 0x1cc   : > { %1834 = vtanh.f32 %v1077_v46  ;;  %v1056_v15 = vadd.f32 0.5, %v1052_v59 }
 0x1cd   : > { %1836 = vtanh.f32 %v1075_v48 }
 0x1ce   : > { %v1819_v52 = vpop.eup %1818  ;;  %1838 = vtanh.f32 %v1078_v51 }
 0x1cf   : > { %v1821_v55 = vpop.eup %1820  ;;  %v1069_v57 = vmul.f32 0.5, %v1819_v52  ;;  %1840 = vtanh.f32 %v1076_v54 }
 0x1d0   : > { %v1823_v58 = vpop.eup %1822  ;;  %v1067_v61 = vmul.f32 0.5, %v1821_v55 }
 0x1d1   : > { %v1825_v62 = vpop.eup %1824  ;;  %v1073_v0 = vadd.f32 0.5, %v1069_v57  ;;  %v1070_v2 = vmul.f32 0.5, %v1823_v58 }
 0x1d2   : > { %v1827_v3 = vpop.eup %1826  ;;  %v1071_v5 = vadd.f32 0.5, %v1067_v61  ;;  %v1068_v7 = vmul.f32 0.5, %v1825_v62 }
 0x1d3   : > { %v1829_v8 = vpop.eup %1828  ;;  %v1101_v10 = vmul.f32 %v1097_v60, %v1073_v0  ;;  %v1074_v11 = vadd.f32 0.5, %v1070_v2  ;;  %v1105_v13 = vmul.f32 %v1827_v3, %v1057_v63 }
 0x1d4   : > { %v1831_v14 = vpop.eup %1830  ;;  %v1099_v16 = vmul.f32 %v1095_v1, %v1071_v5  ;;  %v1072_v17 = vadd.f32 0.5, %v1068_v7  ;;  %v1103_v18 = vmul.f32 %v1829_v8, %v1055_v4 }
 0x1d5   : > { %v1833_v19 = vpop.eup %1832  ;;  %v1102_v20 = vmul.f32 %v1098_v6, %v1074_v11  ;;  %v1109_v21 = vadd.f32 %v1105_v13, %v1101_v10  ;;  %v1106_v22 = vmul.f32 %v1831_v14, %v1058_v9 }
 0x1d6   : > { %v1100_v23 = vmul.f32 %v1096_v12, %v1072_v17  ;;  %v1107_v24 = vadd.f32 %v1103_v18, %v1099_v16  ;;  %v1104_v25 = vmul.f32 %v1833_v19, %v1056_v15  ;;  %v1835_v28 = vpop.eup %1834 }
 0x1d7   : > { %1842 = vtanh.f32 %v1109_v21  ;;  %1141 = vst [vmem:[%s2164_s25 + $0x10] sm:$0xff] %v1109_v21  ;;  %v1110_v26 = vadd.f32 %v1106_v22, %v1102_v20  ;;  %v1837_v29 = vpop.eup %1836  ;;  %v1085_v32 = vmul.f32 0.5, %v1835_v28 }
 0x1d8   : > { %1844 = vtanh.f32 %v1107_v24  ;;  %1139 = vst [vmem:[%s2164_s25] sm:$0xff] %v1107_v24  ;;  %v1108_v27 = vadd.f32 %v1104_v25, %v1100_v23  ;;  %v1839_v30 = vpop.eup %1838  ;;  %v1083_v33 = vmul.f32 0.5, %v1837_v29 }
 0x1d9   : > { %1846 = vtanh.f32 %v1110_v26  ;;  %1142 = vst [vmem:[%s2164_s25 + $0x18] sm:$0xff] %v1110_v26  ;;  %v1841_v31 = vpop.eup %1840  ;;  %v1086_v34 = vmul.f32 0.5, %v1839_v30  ;;  %v1089_v36 = vadd.f32 0.5, %v1085_v32 }
 0x1da   : > { %1848 = vtanh.f32 %v1108_v27  ;;  %1140 = vst [vmem:[%s2164_s25 + $0x8] sm:$0xff] %v1108_v27  ;;  %v1084_v35 = vmul.f32 0.5, %v1841_v31  ;;  %v1087_v38 = vadd.f32 0.5, %v1083_v33 }
 0x1db   : > { %v1090_v40 = vadd.f32 0.5, %v1086_v34 }
 0x1dc   : > { %v1088_v43 = vadd.f32 0.5, %v1084_v35 }
 0x1e1   : > { %v1843_v37 = vpop.eup %1842 }
 0x1e2   : > { %v1845_v39 = vpop.eup %1844  ;;  %v1117_v41 = vmul.f32 %v1843_v37, %v1089_v36 }
 0x1e3   : > { %v1847_v42 = vpop.eup %1846  ;;  %v1115_v44 = vmul.f32 %v1845_v39, %v1087_v38  ;;  %1153 = sbr.rel (!%p1981_p6) target bundleno = 499 (0x1f3), region = 74 }
 0x1e4   : > { %v1849_v45 = vpop.eup %1848  ;;  %v1118_v46 = vmul.f32 %v1847_v42, %v1090_v40 }
 0x1e5   : > { %v1116_v47 = vmul.f32 %v1849_v45, %v1088_v43 }
 0x1e6   : > { %v1501_v48 = vpack.c.bf16 %v1118_v46, %v1117_v41 }
 0x1e7   : > { %v1496_v49 = vpack.c.bf16 %v1116_v47, %v1115_v44 }
 0x1e8   : > { %1503 = vst [vmem:[%s283_s28 + $0x8] sm:$0xff] %v1501_v48  }
 0x1e9   : > { %1497 = vst [vmem:[%s283_s28] sm:$0xff] %v1496_v49  }
 0x1ef   : > { %v1177_v52 = vld [vmem:[%s283_s28 + $0x8] sm:$0xf]  ;;  %v1179_v53 = vld [vmem:[%s283_s28 + $0xc] sm:$0xf] }
 0x1f0   : > { %v1173_v50 = vld [vmem:[%s283_s28] sm:$0xf]  ;;  %v1175_v51 = vld [vmem:[%s283_s28 + $0x4] sm:$0xf]  ;;  %1178 = vst [vmem:[%s1157_s8 + $0x10] sm:$0xf] %v1177_v52 }
 0x1f1   : > { %1174 = vst [vmem:[%s1157_s8] sm:$0xf] %v1173_v50  ;;  %1176 = vst [vmem:[%s1157_s8 + $0x8] sm:$0xf] %v1175_v51 }
 0x1f2   : > { %1180 = vst [vmem:[%s1157_s8 + $0x18] sm:$0xf] %v1179_v53 }
 0x1f3 PF: > { %1211 = sbr.rel (!%p1981_p6) target bundleno = 506 (0x1fa), region = 115  ;;  %s1485_s9 = sshll.u32 (%p1981_p6), %s1892_s18, 3  ;;  %v1249_v54 = vld [vmem:[%s2164_s25] sm:$0xff] (%p1981_p6)  ;;  %v1251_v55 = vld [vmem:[%s2164_s25 + $0x8] sm:$0xff] (%p1981_p6)  ;;  %v1253_v56 = vld [vmem:[%s2164_s25 + $0x10] sm:$0xff] (%p1981_p6) }
 0x1f4   : > { %s1213_s10 = sadd.s32 (%p1981_p6), %s1888_s17, %s1485_s9  ;;  %v1255_v57 = vld [vmem:[%s2164_s25 + $0x18] sm:$0xff] (%p1981_p6) }
 0x1f5   : > { %s1486_s11 = sshll.u32 (%p1981_p6), %s1213_s10, 3 }
 0x1f6   : > { %s1215_s24 = scalar_lea.vmem (%p1981_p6), %s2215_s4, %s1486_s11 }
 0x1f7   : > { %1250 = vst [vmem:[%s1215_s24] sm:$0xff] (%p1981_p6), %v1249_v54  ;;  %1252 = vst [vmem:[%s1215_s24 + $0x10] sm:$0xff] (%p1981_p6), %v1251_v55 }
 0x1f8   : > { %1254 = vst [vmem:[%s1215_s24 + $0x20] sm:$0xff] (%p1981_p6), %v1253_v56  ;;  %1256 = vst [vmem:[%s1215_s24 + $0x30] sm:$0xff] (%p1981_p6), %v1255_v57 }
 0x1fa PF: > { %s15_s21 = sadd.s32 1, %s1904_s21   ;;  %s2217_s15 = smov %s1884_s16 }
 0x1fb   : > { %p12_p0 = scmp.ge.s32.totalorder %s15_s21, 6   ;;  %s2218_s16 = smov %s1989_s30 }
 0x1fc   : > { %s2219_s17 = smov %s1896_s19  ;;  %s2220_s18 = smov %s1900_s20 }
 0x1fd   : > { %s2221_s19 = smov %s2224_s22  ;;  %s2222_s20 = smov %s2228_s23 }
 0x1fe   :  { %14 = sbr.rel (!%p12_p0) target bundleno = 4 (0x4), region = 201 }

</bundles_post_ra>
